<compile_context>
chip_gen: v7x
topology: tpu7x:2x2x1
jax: 0.10.0
libtpu: 0.0.40
codegen_flags: <defaults>
</compile_context>

<pallas_src>
import jax
import jax.numpy as jnp
from jax.experimental import pallas as pl
from jax.experimental.pallas import tpu as pltpu


def _round_up(n: int, m: int) -> int:
    return ((n + m - 1) // m) * m


def _condition_net_kernel(x_ref, w_in_ref, b_in_ref, w_h_ref, b_h_ref,
                          w_out_ref, b_out_ref, out_ref):
    w_dtype = w_in_ref.dtype

    # input_fc  (bf16 x bf16 -> f32 accumulate on the MXU)
    h = jnp.dot(x_ref[...].astype(w_dtype), w_in_ref[...],
                preferred_element_type=jnp.float32)
    h = h + b_in_ref[...]                       # (1, H_pad) sublane-broadcast add, f32

    # hidden_fc: num_layers - 1 layers, statically unrolled
    for l in range(w_h_ref.shape[0]):
        h = jnp.dot(h.astype(w_dtype), w_h_ref[l],
                    preferred_element_type=jnp.float32)
        h = h + b_h_ref[l]                      # (1, H_pad) 2-D slice -> broadcast add

    # output_fc
    out = jnp.dot(h.astype(w_dtype), w_out_ref[...],
                  preferred_element_type=jnp.float32)
    out = out + b_out_ref[...]
    out_ref[...] = out.astype(out_ref.dtype)


def condition_net_forward(x, params, *, batch_tile=1024):
    """x: (B, input_dim) f32/bf16.  params from init_params (padded, pre-transposed)."""
    B, D = x.shape
    in_dim = params["input_dim"]
    out_dim = params["output_dim"]
    assert D == in_dim, f"expected input_dim={in_dim}, got {D}"

    D_pad, H_pad = params["w_in"].shape
    O_pad = params["w_out"].shape[1]
    L = params["w_h"].shape[0]
    w_dtype = params["w_in"].dtype
    w_bytes = jnp.dtype(w_dtype).itemsize

    # --- batch tile (sublane axis): multiple of 8; 256-aligned and >= 2 blocks for v7x ---
    if B <= 256:
        TB = _round_up(B, 8)                         # single small tile; masked last rows
    else:
        TB = max(256, min(_round_up(batch_tile, 256),
                          _round_up(pl.cdiv(B, 2), 256)))
    n_blocks = pl.cdiv(B, TB)

    # --- input stream: avoid the extra HBM pass whenever possible ---
    if D == D_pad:
        x_in = x                                     # no copy; kernel casts to w_dtype
    else:
        # pad + cast in one pass (zero columns hit zero weight rows -> no effect on result)
        x_in = jnp.zeros((B, D_pad), w_dtype).at[:, :D].set(x.astype(w_dtype))
    x_itemsize = jnp.dtype(x_in.dtype).itemsize

    # --- VMEM budget: 2x pipeline buffers on every input (weights included), activation
    #     tiles, the f32 h intermediate + its bf16 cast copy, plus compiler headroom ---
    weight_keys = ("w_in", "b_in", "w_h", "b_h", "w_out", "b_out")
    weight_bytes = sum(int(params[k].size) * params[k].dtype.itemsize for k in weight_keys)
    act_bytes = 2 * TB * (D_pad * x_itemsize + O_pad * 4)   # double-buffered x / out tiles
    h_bytes = TB * H_pad * (4 + w_bytes)                    # f32 h + bf16 cast copy
    vmem_need = 2 * weight_bytes + act_bytes + h_bytes + (4 << 20)
    vmem_limit = int(min(max(vmem_need, 32 << 20), 48 << 20))   # headroom under v7x 64 MiB

    # --- advisory cost estimate so XLA schedules around the custom call ---
    flops = 2 * B * (D_pad * H_pad + L * H_pad * H_pad + H_pad * O_pad)
    bytes_accessed = B * D_pad * x_itemsize + B * O_pad * 4 + weight_bytes
    cost = pl.CostEstimate(flops=flops, transcendentals=0, bytes_accessed=bytes_accessed)

    out_p = pl.pallas_call(
        _condition_net_kernel,
        out_shape=jax.ShapeDtypeStruct((B, O_pad), jnp.float32),
        grid=(n_blocks,),
        in_specs=[
            pl.BlockSpec((TB, D_pad), lambda i: (i, 0)),           # x tile (pipelined)
            pl.BlockSpec((D_pad, H_pad), lambda i: (0, 0)),        # w_in  (VMEM-resident)
            pl.BlockSpec((1, H_pad), lambda i: (0, 0)),            # b_in
            pl.BlockSpec((L, H_pad, H_pad), lambda i: (0, 0, 0)),  # w_h
            pl.BlockSpec((L, 1, H_pad), lambda i: (0, 0, 0)),      # b_h
            pl.BlockSpec((H_pad, O_pad), lambda i: (0, 0)),        # w_out
            pl.BlockSpec((1, O_pad), lambda i: (0, 0)),            # b_out
        ],
        out_specs=pl.BlockSpec((TB, O_pad), lambda i: (i, 0)),
        compiler_params=pltpu.CompilerParams(
            dimension_semantics=("parallel",),       # shards batch across v7x's 2 TCs
            vmem_limit_bytes=vmem_limit,
        ),
        cost_estimate=cost,
    )(x_in, params["w_in"], params["b_in"], params["w_h"], params["b_h"],
      params["w_out"], params["b_out"])

    return out_p[:, :out_dim]


def init_params(key, input_dim, hidden_dim, output_dim, num_layers=2,
                weight_dtype=jnp.bfloat16):
    """Deterministic synthetic init (shapes match the PyTorch module's __init__).
    Weights are pre-transposed ((in_features, out_features)), zero-padded so every feature
    dim feeding the MXU is a multiple of 128, and stored in bf16 by default (native MXU
    input dtype). Biases stay f32 (v5e-safe; added after the f32 accumulation)."""
    assert num_layers >= 2, "kernel expects at least one hidden layer (num_layers >= 2)"
    L = num_layers - 1
    D_pad = _round_up(input_dim, 128)
    H_pad = _round_up(hidden_dim, 128)
    O_pad = _round_up(output_dim, 128)

    k = jax.random.split(key, 6)
    s_in = 1.0 / (input_dim ** 0.5)
    s_h = 1.0 / (hidden_dim ** 0.5)

    w_in = jax.random.uniform(k[0], (input_dim, hidden_dim), jnp.float32, -s_in, s_in)
    b_in = jax.random.uniform(k[1], (1, hidden_dim), jnp.float32, -s_in, s_in)
    w_h = jax.random.uniform(k[2], (L, hidden_dim, hidden_dim), jnp.float32, -s_h, s_h)
    b_h = jax.random.uniform(k[3], (L, 1, hidden_dim), jnp.float32, -s_h, s_h)
    w_out = jax.random.uniform(k[4], (hidden_dim, output_dim), jnp.float32, -s_h, s_h)
    b_out = jax.random.uniform(k[5], (1, output_dim), jnp.float32, -s_h, s_h)

    params = {
        "w_in": jnp.zeros((D_pad, H_pad), weight_dtype)
                   .at[:input_dim, :hidden_dim].set(w_in.astype(weight_dtype)),
        "b_in": jnp.zeros((1, H_pad), jnp.float32).at[:, :hidden_dim].set(b_in),
        "w_h": jnp.zeros((L, H_pad, H_pad), weight_dtype)
                  .at[:, :hidden_dim, :hidden_dim].set(w_h.astype(weight_dtype)),
        "b_h": jnp.zeros((L, 1, H_pad), jnp.float32).at[:, :, :hidden_dim].set(b_h),
        "w_out": jnp.zeros((H_pad, O_pad), weight_dtype)
                    .at[:hidden_dim, :output_dim].set(w_out.astype(weight_dtype)),
        "b_out": jnp.zeros((1, O_pad), jnp.float32).at[:, :output_dim].set(b_out),
        "input_dim": input_dim,
        "output_dim": output_dim,
    }
    return params


def reference_forward(x, params):
    """Pure-JAX reference with the SAME mixed precision as the kernel (bf16 operands,
    f32 accumulation), so the comparison tolerance can stay tight."""
    wd = params["w_in"].dtype
    D = params["input_dim"]
    h = jnp.dot(x.astype(wd), params["w_in"][:D], preferred_element_type=jnp.float32)
    h = h + params["b_in"]
    for l in range(params["w_h"].shape[0]):
        h = jnp.dot(h.astype(wd), params["w_h"][l], preferred_element_type=jnp.float32)
        h = h + params["b_h"][l]
    out = jnp.dot(h.astype(wd), params["w_out"], preferred_element_type=jnp.float32)
    out = out + params["b_out"]
    return out[:, :params["output_dim"]]


if __name__ == "__main__":
    B, input_dim, hidden_dim, output_dim, num_layers = 8, 16, 32, 8, 2

    key = jax.random.PRNGKey(0)
    kx, kp = jax.random.split(key)
    x = jax.random.normal(kx, (B, input_dim), jnp.float32)
    params = init_params(kp, input_dim, hidden_dim, output_dim, num_layers)

    out = condition_net_forward(x, params)
    out = jax.block_until_ready(out)

    ref = reference_forward(x, params)
    assert out.shape == (B, output_dim)
    assert jnp.allclose(out, ref, atol=1e-2, rtol=1e-2), \
        float(jnp.max(jnp.abs(out - ref)))

    print("KERNEL_OK")
</pallas_src>

<mosaic_0001>
module attributes {stable_mosaic.version = 11 : i64} {
  func.func @_condition_net_kernel(%arg0: i32, %arg1: memref<8x128xbf16, #tpu.memory_space<vmem>>, %arg2: memref<128x128xbf16, #tpu.memory_space<vmem>>, %arg3: memref<1x128xf32, #tpu.memory_space<vmem>>, %arg4: memref<1x128x128xbf16, #tpu.memory_space<vmem>>, %arg5: memref<1x1x128xf32, #tpu.memory_space<vmem>>, %arg6: memref<128x128xbf16, #tpu.memory_space<vmem>>, %arg7: memref<1x128xf32, #tpu.memory_space<vmem>>, %arg8: memref<8x128xf32, #tpu.memory_space<vmem>>) attributes {dimension_semantics = [#tpu.dimension_semantics<parallel>], iteration_bounds = array<i64: 1>, scalar_prefetch = 0 : i64, scratch_operands = 0 : i64, tpu.core_type = #tpu.core_type<tc>, window_params = [{transform_indices = @transform_0, window_bounds = array<i64: 8, 128>}, {pipeline_mode = #tpu.pipeline_mode<synchronous>, transform_indices = @transform_1, window_bounds = array<i64: 128, 128>}, {pipeline_mode = #tpu.pipeline_mode<synchronous>, transform_indices = @transform_2, window_bounds = array<i64: 1, 128>}, {pipeline_mode = #tpu.pipeline_mode<synchronous>, transform_indices = @transform_3, window_bounds = array<i64: 1, 128, 128>}, {pipeline_mode = #tpu.pipeline_mode<synchronous>, transform_indices = @transform_4, window_bounds = array<i64: 1, 1, 128>}, {pipeline_mode = #tpu.pipeline_mode<synchronous>, transform_indices = @transform_5, window_bounds = array<i64: 128, 128>}, {pipeline_mode = #tpu.pipeline_mode<synchronous>, transform_indices = @transform_6, window_bounds = array<i64: 1, 128>}, {transform_indices = @transform_7, window_bounds = array<i64: 8, 128>}]} {
    %c0 = arith.constant 0 : index
    %c0_0 = arith.constant 0 : index
    %0 = vector.load %arg1[%c0, %c0_0] : memref<8x128xbf16, #tpu.memory_space<vmem>>, vector<8x128xbf16>
    %c0_1 = arith.constant 0 : index
    %c0_2 = arith.constant 0 : index
    %1 = vector.load %arg2[%c0_1, %c0_2] : memref<128x128xbf16, #tpu.memory_space<vmem>>, vector<128x128xbf16>
    %cst = arith.constant dense<0.000000e+00> : vector<8x128xf32>
    %2 = tpu.matmul %0, %1, %cst {dimension_numbers = #tpu.dot_dimension_numbers<[1], [0], [0], [1], [0, 0, 1, 1], [], []>} : vector<8x128xbf16>, vector<128x128xbf16>, vector<8x128xf32> -> vector<8x128xf32>
    %c0_3 = arith.constant 0 : index
    %c0_4 = arith.constant 0 : index
    %3 = vector.load %arg3[%c0_3, %c0_4] : memref<1x128xf32, #tpu.memory_space<vmem>>, vector<1x128xf32>
    %4 = vector.broadcast %3 : vector<1x128xf32> to vector<8x128xf32>
    %5 = arith.addf %2, %4 : vector<8x128xf32>
    %6 = arith.truncf %5 : vector<8x128xf32> to vector<8x128xbf16>
    %c0_5 = arith.constant 0 : index
    %c0_6 = arith.constant 0 : index
    %c0_7 = arith.constant 0 : index
    %7 = vector.load %arg4[%c0_5, %c0_6, %c0_7] : memref<1x128x128xbf16, #tpu.memory_space<vmem>>, vector<1x128x128xbf16>
    %8 = vector.shape_cast %7 : vector<1x128x128xbf16> to vector<128x128xbf16>
    %cst_8 = arith.constant dense<0.000000e+00> : vector<8x128xf32>
    %9 = tpu.matmul %6, %8, %cst_8 {dimension_numbers = #tpu.dot_dimension_numbers<[1], [0], [0], [1], [0, 0, 1, 1], [], []>} : vector<8x128xbf16>, vector<128x128xbf16>, vector<8x128xf32> -> vector<8x128xf32>
    %c0_9 = arith.constant 0 : index
    %c0_10 = arith.constant 0 : index
    %c0_11 = arith.constant 0 : index
    %10 = vector.load %arg5[%c0_9, %c0_10, %c0_11] : memref<1x1x128xf32, #tpu.memory_space<vmem>>, vector<1x1x128xf32>
    %11 = vector.shape_cast %10 : vector<1x1x128xf32> to vector<1x128xf32>
    %12 = vector.broadcast %11 : vector<1x128xf32> to vector<8x128xf32>
    %13 = arith.addf %9, %12 : vector<8x128xf32>
    %14 = arith.truncf %13 : vector<8x128xf32> to vector<8x128xbf16>
    %c0_12 = arith.constant 0 : index
    %c0_13 = arith.constant 0 : index
    %15 = vector.load %arg6[%c0_12, %c0_13] : memref<128x128xbf16, #tpu.memory_space<vmem>>, vector<128x128xbf16>
    %cst_14 = arith.constant dense<0.000000e+00> : vector<8x128xf32>
    %16 = tpu.matmul %14, %15, %cst_14 {dimension_numbers = #tpu.dot_dimension_numbers<[1], [0], [0], [1], [0, 0, 1, 1], [], []>} : vector<8x128xbf16>, vector<128x128xbf16>, vector<8x128xf32> -> vector<8x128xf32>
    %c0_15 = arith.constant 0 : index
    %c0_16 = arith.constant 0 : index
    %17 = vector.load %arg7[%c0_15, %c0_16] : memref<1x128xf32, #tpu.memory_space<vmem>>, vector<1x128xf32>
    %18 = vector.broadcast %17 : vector<1x128xf32> to vector<8x128xf32>
    %19 = arith.addf %16, %18 : vector<8x128xf32>
    %c0_17 = arith.constant 0 : index
    %c0_18 = arith.constant 0 : index
    %20 = vector.load %arg8[%c0_17, %c0_18] : memref<8x128xf32, #tpu.memory_space<vmem>>, vector<8x128xf32>
    tpu.vector_store %arg8[%c0_17, %c0_18], %19 {strides = array<i32>} : memref<8x128xf32, #tpu.memory_space<vmem>>, vector<8x128xf32>,
    return
  }
  func.func @transform_0(%arg0: i32) -> (i32, i32) {
    %c0_i32 = arith.constant 0 : i32
    %c0_i32_0 = arith.constant 0 : i32
    return %arg0, %c0_i32 : i32, i32
  }
  func.func @transform_1(%arg0: i32) -> (i32, i32) {
    %c0_i32 = arith.constant 0 : i32
    %c0_i32_0 = arith.constant 0 : i32
    %c0_i32_1 = arith.constant 0 : i32
    return %c0_i32, %c0_i32_0 : i32, i32
  }
  func.func @transform_2(%arg0: i32) -> (i32, i32) {
    %c0_i32 = arith.constant 0 : i32
    %c0_i32_0 = arith.constant 0 : i32
    %c0_i32_1 = arith.constant 0 : i32
    return %c0_i32, %c0_i32_0 : i32, i32
  }
  func.func @transform_3(%arg0: i32) -> (i32, i32, i32) {
    %c0_i32 = arith.constant 0 : i32
    %c0_i32_0 = arith.constant 0 : i32
    %c0_i32_1 = arith.constant 0 : i32
    %c0_i32_2 = arith.constant 0 : i32
    return %c0_i32, %c0_i32_0, %c0_i32_1 : i32, i32, i32
  }
  func.func @transform_4(%arg0: i32) -> (i32, i32, i32) {
    %c0_i32 = arith.constant 0 : i32
    %c0_i32_0 = arith.constant 0 : i32
    %c0_i32_1 = arith.constant 0 : i32
    %c0_i32_2 = arith.constant 0 : i32
    return %c0_i32, %c0_i32_0, %c0_i32_1 : i32, i32, i32
  }
  func.func @transform_5(%arg0: i32) -> (i32, i32) {
    %c0_i32 = arith.constant 0 : i32
    %c0_i32_0 = arith.constant 0 : i32
    %c0_i32_1 = arith.constant 0 : i32
    return %c0_i32, %c0_i32_0 : i32, i32
  }
  func.func @transform_6(%arg0: i32) -> (i32, i32) {
    %c0_i32 = arith.constant 0 : i32
    %c0_i32_0 = arith.constant 0 : i32
    %c0_i32_1 = arith.constant 0 : i32
    return %c0_i32, %c0_i32_0 : i32, i32
  }
  func.func @transform_7(%arg0: i32) -> (i32, i32) {
    %c0_i32 = arith.constant 0 : i32
    %c0_i32_0 = arith.constant 0 : i32
    return %arg0, %c0_i32 : i32, i32
  }
}

</mosaic_0001>

<bundles_post_ra>
// kernel: tpu_custom_call.1
= control target key start
LH: loop header
LB: loop body
LE: loop exit
PB: predicated region body
PF: predicated region fallthrough
CT: control target
= control target key end

     0   :  { %12 = vsyncpa [#allocation3], 0  ;;  %s857_s0 = inlined_call_operand.hbm [shape: bf16[8,128], index: 0, kind: input, shape index: {}]   ;;  %s858_s1 = inlined_call_operand.hbm [shape: bf16[128,128], index: 1, kind: input, shape index: {}]   ;;  %s859_s2 = inlined_call_operand.vmem [shape: f32[1,128], index: 2, kind: input, shape index: {}]   ;;  %s860_s3 = inlined_call_operand.hbm [shape: bf16[1,128,128], index: 3, kind: input, shape index: {}]   ;;  %s861_s4 = inlined_call_operand.vmem [shape: f32[1,1,128], index: 4, kind: input, shape index: {}]   ;;  %s862_s5 = inlined_call_operand.hbm [shape: bf16[128,128], index: 5, kind: input, shape index: {}]   ;;  %s863_s6 = inlined_call_operand.vmem [shape: f32[1,128], index: 6, kind: input, shape index: {}]   ;;  %s864_s7 = inlined_call_operand.hbm [shape: f32[8,128], index: 7, kind: output, shape index: {}]  }
   0x1   :  { %13 = vsyncpa [#allocation6], 0 }
   0x2   :  { %14 = vsyncpa [#allocation9], 0 }
   0x3   :  { %15 = vsyncpa [#allocation4], 0  ;;  %s700_s24 = smov [#allocation5]   ;;  %s582_s28 = scalar_lea.hbm %s858_s1, 1024 }
   0x4   :  { %s31_s25 = sshll.u32 %s700_s24, 4  ;;  %p583_p0 = scmp.ne.s32.totalorder %s858_s1, %s582_s28  ;;  %s32_s25 = int_to_ptr.vmem [resolvable:$true] %s31_s25 }
   0x5   :  { %p586_p1 = scmp.lt.u32.totalorder %s582_s28, %s858_s1 }
   0x7   :  { %p588_p2 = pnand %p586_p1, %p583_p0 }
   0x9   :  { %591 = shalt.err (!%p588_p2)
}
   0xa   :  { %s592_s10 = scalar_lea.vmem %s32_s25, 1024  ;;  %p597_p4 = scmp.lt.s32.totalorder %s32_s25, %s32_s25 }
   0xb   :  { %p593_p3 = scmp.ne.s32.totalorder %s32_s25, %s592_s10  ;;  %p598_p5 = scmp.lt.s32.totalorder %s592_s10, %s592_s10 }
   0xd   :  { %p599_p6 = por %p598_p5, %p597_p4 }
   0xf   :  { %p600_p7 = pnand %p599_p6, %p593_p3 }
  0x11   :  { %603 = shalt.err (!%p600_p7)
}
  0x12   :  { %s701_s11 = smov 64   ;;  %s702_s12 = smov 4  }
  0x13   :  { %37 = dma.hbm_to_vmem [thread:$0]  %s858_s1, 1024, %s32_s25, [#allocation6], %s701_s11, %s701_s11, %s702_s12  }
  0x14   :  { %s703_s15 = smov [#allocation2]   ;;  %s704_s17 = smov [#allocation7]  }
  0x15   :  { %s22_s16 = sshll.u32 %s703_s15, 4  ;;  %s45_s18 = sshll.u32 %s704_s17, 4  ;;  %s23_s16 = int_to_ptr.vmem [resolvable:$true] %s22_s16  ;;  %s46_s18 = int_to_ptr.vmem [resolvable:$true] %s45_s18 }
  0x16   :  { %s604_s21 = scalar_lea.hbm %s857_s0, 64 }
  0x17   :  { %p605_p8 = scmp.ne.s32.totalorder %s857_s0, %s604_s21  ;;  %p608_p9 = scmp.lt.u32.totalorder %s604_s21, %s857_s0 }
  0x19   :  { %p610_p10 = pnand %p608_p9, %p605_p8 }
  0x1b   :  { %613 = shalt.err (!%p610_p10)
}
  0x1c   :  { %s614_s1 = scalar_lea.vmem %s23_s16, 64  ;;  %p619_p12 = scmp.lt.s32.totalorder %s23_s16, %s23_s16 }
  0x1d   :  { %p615_p11 = scmp.ne.s32.totalorder %s23_s16, %s614_s1  ;;  %p620_p13 = scmp.lt.s32.totalorder %s614_s1, %s614_s1 }
  0x1f   :  { %p621_p0 = por %p620_p13, %p619_p12 }
  0x21   :  { %p622_p1 = pnand %p621_p0, %p615_p11 }
  0x23   :  { %625 = shalt.err (!%p622_p1)
}
  0x24   :  { %25 = dma.hbm_to_vmem [thread:$0]  %s857_s0, 64, %s23_s16, [#allocation3]  }
  0x25   :  { %s626_s30 = scalar_lea.hbm %s860_s3, 1024 }
  0x26   :  { %p627_p2 = scmp.ne.s32.totalorder %s860_s3, %s626_s30  ;;  %p630_p3 = scmp.lt.u32.totalorder %s626_s30, %s860_s3 }
  0x28   :  { %p632_p4 = pnand %p630_p3, %p627_p2 }
  0x2a   :  { %635 = shalt.err (!%p632_p4)
}
  0x2b   :  { %s636_s14 = scalar_lea.vmem %s46_s18, 1024  ;;  %p641_p6 = scmp.lt.s32.totalorder %s46_s18, %s46_s18 }
  0x2c   :  { %p637_p5 = scmp.ne.s32.totalorder %s46_s18, %s636_s14  ;;  %p642_p7 = scmp.lt.s32.totalorder %s636_s14, %s636_s14 }
  0x2e   :  { %p643_p8 = por %p642_p7, %p641_p6 }
  0x30   :  { %p644_p9 = pnand %p643_p8, %p637_p5 }
  0x32   :  { %647 = shalt.err (!%p644_p9)
}
  0x33   :  { %51 = dma.hbm_to_vmem [thread:$0]  %s860_s3, 1024, %s46_s18, [#allocation6], %s701_s11, %s701_s11, %s702_s12  }
  0x34   :  { %s705_s16 = smov [#allocation8]   ;;  %s648_s21 = scalar_lea.hbm %s862_s5, 1024 }
  0x35   :  { %s59_s17 = sshll.u32 %s705_s16, 4  ;;  %p649_p10 = scmp.ne.s32.totalorder %s862_s5, %s648_s21  ;;  %s60_s17 = int_to_ptr.vmem [resolvable:$true] %s59_s17 }
  0x36   :  { %p652_p11 = scmp.lt.u32.totalorder %s648_s21, %s862_s5 }
  0x38   :  { %p654_p12 = pnand %p652_p11, %p649_p10 }
  0x3a   :  { %657 = shalt.err (!%p654_p12)
}
  0x3b   :  { %s658_s1 = scalar_lea.vmem %s60_s17, 1024  ;;  %p663_p0 = scmp.lt.s32.totalorder %s60_s17, %s60_s17 }
  0x3c   :  { %p659_p13 = scmp.ne.s32.totalorder %s60_s17, %s658_s1  ;;  %p664_p1 = scmp.lt.s32.totalorder %s658_s1, %s658_s1 }
  0x3e   :  { %p665_p2 = por %p664_p1, %p663_p0 }
  0x40   :  { %p666_p3 = pnand %p665_p2, %p659_p13 }
  0x42   :  { %669 = shalt.err (!%p666_p3)
}
  0x43   :  { %65 = dma.hbm_to_vmem [thread:$0]  %s862_s5, 1024, %s60_s17, [#allocation9], %s701_s11, %s701_s11, %s702_s12  }
  0x44   :  { %692 = dma.done.wait [#allocation3], 64  }
  0x45   :  { %693 = vsyncadd [#allocation3], 4294967232 }
  0x46   :  { %694 = dma.done.wait [#allocation6], 2048  }
  0x47   :  { %695 = vsyncadd [#allocation6], 4294965248 }
  0x48   :  { %696 = dma.done.wait [#allocation9], 1024  }
  0x49   :  { %697 = vsyncadd [#allocation9], 4294966272  ;;  %v706_v0 = vmov 0.0   ;;  %vm707_vm0 = vmmov 0   ;;  %v558_v1 = vld [vmem:[#allocation5] sm:$0xff]   ;;  %v559_v2 = vld [vmem:[#allocation5 + $0x8] sm:$0xff]  }
  0x4a   :  { %489 = vmatprep.subr.bf16.mxu0 %v706_v0  ;;  %505 = vmatprep.mubr.msk.bf16.mxu0 %vm707_vm0, %v706_v0  ;;  %v560_v3 = vld [vmem:[#allocation5 + $0x10] sm:$0xff]   ;;  %v566_v4 = vld [vmem:[#allocation7] sm:$0xff]   ;;  %v561_v5 = vld [vmem:[#allocation5 + $0x18] sm:$0xff]   ;;  %s708_s28 = smov [#allocation10]  }
  0x4b   :  { %509 = vmatprep.subr.bf16.mxu1 %v706_v0  ;;  %525 = vmatprep.mubr.msk.bf16.mxu1 %vm707_vm0, %v706_v0  ;;  %v567_v6 = vld [vmem:[#allocation7 + $0x8] sm:$0xff]   ;;  %v562_v7 = vld [vmem:[#allocation5 + $0x20] sm:$0xff]   ;;  %v568_v8 = vld [vmem:[#allocation7 + $0x10] sm:$0xff]   ;;  %s424_s29 = sshll.u32 %s708_s28, 4  ;;  %s425_s29 = int_to_ptr.vmem [resolvable:$true] %s424_s29 }
  0x4c   :  { %490 = vmatpush3.bf16.msra.mxu0 %v558_v1  ;;  %510 = vmatpush3.bf16.msra.mxu1 %v566_v4  ;;  %v563_v9 = vld [vmem:[#allocation5 + $0x28] sm:$0xff]   ;;  %v569_v10 = vld [vmem:[#allocation7 + $0x18] sm:$0xff]   ;;  %v564_v11 = vld [vmem:[#allocation5 + $0x30] sm:$0xff]   ;;  %p675_p5 = scmp.lt.s32.totalorder %s425_s29, %s425_s29 }
  0x4d   :  { %491 = vmatprep.subr.bf16.mxu0 %v706_v0  ;;  %511 = vmatprep.subr.bf16.mxu1 %v706_v0  ;;  %v570_v12 = vld [vmem:[#allocation7 + $0x20] sm:$0xff]   ;;  %v565_v13 = vld [vmem:[#allocation5 + $0x38] sm:$0xff]   ;;  %v571_v14 = vld [vmem:[#allocation7 + $0x28] sm:$0xff]  }
  0x4e   :  { %v81_v15 = vld [vmem:[#allocation2] sm:$0xf]  ;;  %v572_v16 = vld [vmem:[#allocation7 + $0x30] sm:$0xff]   ;;  %v574_v18 = vld [vmem:[#allocation8] sm:$0xff]  }
  0x4f   :  { %v573_v17 = vld [vmem:[#allocation7 + $0x38] sm:$0xff]   ;;  %v575_v19 = vld [vmem:[#allocation8 + $0x8] sm:$0xff]   ;;  %v576_v20 = vld [vmem:[#allocation8 + $0x10] sm:$0xff]  }
  0x50   :  { %492 = vmatpush3.bf16.msra.mxu0 %v559_v2  ;;  %512 = vmatpush3.bf16.msra.mxu1 %v567_v6  ;;  %v577_v21 = vld [vmem:[#allocation8 + $0x18] sm:$0xff]   ;;  %v578_v22 = vld [vmem:[#allocation8 + $0x20] sm:$0xff]   ;;  %v579_v23 = vld [vmem:[#allocation8 + $0x28] sm:$0xff]  }
  0x51   :  { %493 = vmatprep.subr.bf16.mxu0 %v706_v0  ;;  %513 = vmatprep.subr.bf16.mxu1 %v706_v0  ;;  %v580_v24 = vld [vmem:[#allocation8 + $0x30] sm:$0xff]   ;;  %v435_v25 = vld [vmem:[%s859_s2] ss:$0 sm:$0xff] }
  0x52   :  { %v581_v32 = vld [vmem:[#allocation8 + $0x38] sm:$0xff]  }
  0x53   :  { %v444_v33 = vld [vmem:[%s861_s4] ss:$0 sm:$0xff]  ;;  %s670_s4 = scalar_lea.vmem %s425_s29, 128 }
  0x54   :  { %494 = vmatpush3.bf16.msra.mxu0 %v560_v3  ;;  %514 = vmatpush3.bf16.msra.mxu1 %v568_v8  ;;  %v453_v40 = vld [vmem:[%s863_s6] ss:$0 sm:$0xff]  ;;  %p671_p4 = scmp.ne.s32.totalorder %s425_s29, %s670_s4  ;;  %p676_p6 = scmp.lt.s32.totalorder %s670_s4, %s670_s4 }
  0x55   :  { %495 = vmatprep.subr.bf16.mxu0 %v706_v0  ;;  %515 = vmatprep.subr.bf16.mxu1 %v706_v0 }
  0x56   :  { %p677_p7 = por %p676_p6, %p675_p5 }
  0x58   :  { %496 = vmatpush3.bf16.msra.mxu0 %v561_v5  ;;  %516 = vmatpush3.bf16.msra.mxu1 %v569_v10  ;;  %p678_p8 = pnand %p677_p7, %p671_p4 }
  0x59   :  { %497 = vmatprep.subr.bf16.mxu0 %v706_v0  ;;  %517 = vmatprep.subr.bf16.mxu1 %v706_v0 }
  0x5c   :  { %498 = vmatpush3.bf16.msra.mxu0 %v562_v7  ;;  %518 = vmatpush3.bf16.msra.mxu1 %v570_v12 }
  0x5d   :  { %499 = vmatprep.subr.bf16.mxu0 %v706_v0  ;;  %519 = vmatprep.subr.bf16.mxu1 %v706_v0 }
  0x60   :  { %500 = vmatpush3.bf16.msra.mxu0 %v563_v9  ;;  %520 = vmatpush3.bf16.msra.mxu1 %v571_v14 }
  0x61   :  { %501 = vmatprep.subr.bf16.mxu0 %v706_v0  ;;  %521 = vmatprep.subr.bf16.mxu1 %v706_v0 }
  0x64   :  { %502 = vmatpush3.bf16.msra.mxu0 %v564_v11  ;;  %522 = vmatpush3.bf16.msra.mxu1 %v572_v16 }
  0x65   :  { %503 = vmatprep.subr.bf16.mxu0 %v706_v0  ;;  %523 = vmatprep.subr.bf16.mxu1 %v706_v0 }
  0x68   :  { %504 = vmatpush3.bf16.msra.mxu0 %v565_v13  ;;  %524 = vmatpush3.bf16.msra.mxu1 %v573_v17 }
  0x69   :  { %529 = vmatprep.subr.bf16.mxu0 %v706_v0 }
  0x6b   :  { %506 = vmatmul.mubr.bf16.vlgmr.msra.gmra.mrb[0].mxu0 %v81_v15 }
  0x6c   :  { %545 = vmatprep.mubr.msk.bf16.mxu0 %vm707_vm0, %v706_v0  ;;  %530 = vmatpush3.bf16.msra.mxu0 %v574_v18 }
  0x6d   :  { %531 = vmatprep.subr.bf16.mxu0 %v706_v0 }
  0x70   :  { %532 = vmatpush3.bf16.msra.mxu0 %v575_v19 }
  0x71   :  { %533 = vmatprep.subr.bf16.mxu0 %v706_v0 }
  0x74   :  { %534 = vmatpush3.bf16.msra.mxu0 %v576_v20 }
  0x75   :  { %535 = vmatprep.subr.bf16.mxu0 %v706_v0 }
  0x78   :  { %536 = vmatpush3.bf16.msra.mxu0 %v577_v21 }
  0x79   :  { %537 = vmatprep.subr.bf16.mxu0 %v706_v0 }
  0x7c   :  { %538 = vmatpush3.bf16.msra.mxu0 %v578_v22 }
  0x7d   :  { %539 = vmatprep.subr.bf16.mxu0 %v706_v0 }
  0x80   :  { %540 = vmatpush3.bf16.msra.mxu0 %v579_v23 }
  0x81   :  { %541 = vmatprep.subr.bf16.mxu0 %v706_v0 }
  0x84   :  { %542 = vmatpush3.bf16.msra.mxu0 %v580_v24 }
  0x85   :  { %543 = vmatprep.subr.bf16.mxu0 %v706_v0 }
  0x88   :  { %544 = vmatpush3.bf16.msra.mxu0 %v581_v32 }
 0x13e   :  { %v187_v26 = vpop.f32.mrb[0].mxu0 }
 0x13f   :  { %v188_v27 = vadd.f32 %v435_v25, %v187_v26  ;;  %v507_v28 = vpop.f32.mrb[1].mxu0 }
 0x140   :  { %v190_v29 = vpop.f32.mrb[2].mxu0 }
 0x141   :  { %v193_v30 = vpack.c.bf16 %v188_v27, %v188_v27  ;;  %v508_v31 = vpop.f32.mrb[3].mxu0 }
 0x143   :  { %526 = vmatmul.mubr.bf16.vlgmr.msra.gmra.mrb[0].mxu1 %v193_v30 }
 0x216   :  { %v299_v34 = vpop.f32.mrb[0].mxu1 }
 0x217   :  { %v300_v35 = vadd.f32 %v444_v33, %v299_v34  ;;  %v527_v36 = vpop.f32.mrb[1].mxu1 }
 0x218   :  { %v302_v37 = vpop.f32.mrb[2].mxu1 }
 0x219   :  { %v305_v38 = vpack.c.bf16 %v300_v35, %v300_v35  ;;  %v528_v39 = vpop.f32.mrb[3].mxu1 }
 0x21b   :  { %546 = vmatmul.mubr.bf16.vlgmr.msra.gmra.mrb[4].mxu0 %v305_v38 }
 0x2ee   :  { %v411_v41 = vpop.f32.mrb[4].mxu0 }
 0x2ef   :  { %v412_v42 = vadd.f32 %v453_v40, %v411_v41  ;;  %v547_v43 = vpop.f32.mrb[5].mxu0 }
 0x2f0   :  { %v414_v44 = vpop.f32.mrb[6].mxu0 }
 0x2f1   :  { %417 = vst [vmem:[#allocation10] sm:$0xff] %v412_v42  ;;  %v548_v45 = vpop.f32.mrb[7].mxu0 }
 0x2f2   :  { %681 = shalt.err (!%p678_p8)
}
 0x2f3   :  { %s682_s6 = scalar_lea.hbm %s864_s7, 128 }
 0x2f4   :  { %p683_p9 = scmp.ne.s32.totalorder %s864_s7, %s682_s6  ;;  %p686_p10 = scmp.lt.u32.totalorder %s682_s6, %s864_s7 }
 0x2f6   :  { %p688_p11 = pnand %p686_p10, %p683_p9 }
 0x2f8   :  { %691 = shalt.err (!%p688_p11)
}
 0x2f9   :  { %427 = dma.vmem_to_hbm [thread:$0]  %s425_s29, 128, %s864_s7, [#allocation4]  }
 0x2fa   :  { %698 = dma.done.wait [#allocation4], 128  }
 0x2fb   :  { %699 = vsyncadd [#allocation4], 4294967168 }
 0x2fc   :  { %431 = vsyncpa [#allocation3], 1 }
 0x2fd   :  { %432 = vsyncpa [#allocation6], 1 }
 0x2fe   :  { %433 = vsyncpa [#allocation9], 1 }
 0x2ff   :  { %434 = vsyncpa [#allocation4], 1 }

</bundles_post_ra>
